<compile_context>
chip_gen: v5e
topology: v5e:2x2
jax: 0.10.0
libtpu: 0.0.40
codegen_flags: <defaults>
</compile_context>

<pallas_src>
import functools

import jax
import jax.numpy as jnp
from jax.experimental import pallas as pl
from jax.experimental.pallas import tpu as pltpu


def _embedding_identity_kernel(emb_ref, out_ref):
    # Full-array (1, 2) block: one masked vld/vst pair, no grid, no pipeline.
    out_ref[...] = emb_ref[...]


@functools.partial(jax.jit)
def _debug_touch_embedding(embedding: jax.Array) -> jax.Array:
    """Debug-only Pallas touchpoint on the (1, 2) parameter.

    Not used by forward().  If a Pallas touchpoint were genuinely required in
    a real model, the parameter would instead be fused as one extra VMEM
    BlockSpec input of the downstream consumer kernel.
    """
    return pl.pallas_call(
        _embedding_identity_kernel,
        out_shape=jax.ShapeDtypeStruct(embedding.shape, embedding.dtype),
        in_specs=[pl.BlockSpec(memory_space=pltpu.VMEM)],
        out_specs=pl.BlockSpec(memory_space=pltpu.VMEM),
    )(embedding)


class EmbeddingModule:
    """JAX/Pallas mirror of the PyTorch EmbeddingModule."""

    def __init__(self, key: jax.Array):
        # torch.randn(1, 2) equivalent, deterministic via PRNGKey.
        self.embedding = jax.random.normal(key, (1, 2), dtype=jnp.float32)

    def forward(self):
        """
        doesn't do anything
        :return:
        """
        # TODO(synk): PyTorch forward() performs no computation and returns
        # None; per the perf review there is intentionally no pallas_call here.
        return None


if __name__ == "__main__":
    key = jax.random.PRNGKey(0)
    module = EmbeddingModule(key)

    # forward() semantics: returns None, exactly like the PyTorch module.
    result = module.forward()
    assert result is None

    # Exercise the debug-only Pallas touchpoint kernel once on the parameter.
    emb_out = _debug_touch_embedding(module.embedding)
    jax.block_until_ready(emb_out)

    assert emb_out.shape == (1, 2)
    assert emb_out.dtype == jnp.float32
    assert bool(jnp.allclose(emb_out, module.embedding))

    print("KERNEL_OK")
</pallas_src>

<mosaic_0001>
module attributes {stable_mosaic.version = 11 : i64} {
  func.func @_embedding_identity_kernel(%arg0: memref<1x2xf32, #tpu.memory_space<vmem>>, %arg1: memref<1x2xf32, #tpu.memory_space<vmem>>) attributes {dimension_semantics = [], scalar_prefetch = 0 : i64, scratch_operands = 0 : i64, tpu.core_type = #tpu.core_type<tc>} {
    %c0 = arith.constant 0 : index
    %c0_0 = arith.constant 0 : index
    %0 = vector.load %arg0[%c0, %c0_0] : memref<1x2xf32, #tpu.memory_space<vmem>>, vector<1x2xf32>
    %c0_1 = arith.constant 0 : index
    %c0_2 = arith.constant 0 : index
    %1 = vector.load %arg1[%c0_1, %c0_2] : memref<1x2xf32, #tpu.memory_space<vmem>>, vector<1x2xf32>
    tpu.vector_store %arg1[%c0_1, %c0_2], %0 {strides = array<i32>} : memref<1x2xf32, #tpu.memory_space<vmem>>, vector<1x2xf32>,
    return
  }
}

</mosaic_0001>

<bundles_post_ra>
// kernel: _debug_touch_embedding.1
= control target key start
LH: loop header
LB: loop body
LE: loop exit
PB: predicated region body
PF: predicated region fallthrough
CT: control target
= control target key end

     0   :  { %6 = vsyncpa [#allocation3], 0  ;;  %s115_s0 = inlined_call_operand.hbm [shape: f32[1,2], index: 0, kind: input, shape index: {}]   ;;  %s116_s1 = inlined_call_operand.hbm [shape: f32[1,2], index: 1, kind: output, shape index: {}]  }
   0x1   :  { %7 = vsyncpa [#allocation4], 0  ;;  %s13_s8 = sshll.u32 %s115_s0, 4  ;;  %s97_s9 = smov [#allocation2]   ;;  %s14_s8 = int_to_ptr.hbm [resolvable:$true] %s13_s8 }
   0x2   :  { %s15_s10 = sshll.u32 %s97_s9, 4  ;;  %s16_s10 = int_to_ptr.vmem [resolvable:$true] %s15_s10 }
   0x3   :  { %18 = dma.hbm_to_vmem [thread:$0]  %s14_s8, 16, %s16_s10, [#allocation3]  }
   0x4   :  { %93 = dma.done.wait [#allocation3], 16  }
   0x5   :  { %94 = vsyncadd [#allocation3], 4294967280  ;;  %s98_s11 = smov [#allocation5]   ;;  %s33_s15 = sshll.u32 %s116_s1, 4  ;;  %vm24_vm0 = vcmask 8192   ;;  %s34_s15 = int_to_ptr.hbm [resolvable:$true] %s33_s15 }
   0x6   :  { %s31_s12 = sshll.u32 %s98_s11, 4  ;;  %v23_v0 = vld [vmem:[#allocation2] sm:$0x1]  ;;  %s32_s12 = int_to_ptr.vmem [resolvable:$true] %s31_s12 }
   0x7   :  { %25 = vst.msk [vmem:[#allocation5] sm:$0x1] %vm24_vm0, %v23_v0 }
   0x8   :  { %36 = dma.vmem_to_hbm [thread:$0]  %s32_s12, 16, %s34_s15, [#allocation4]  }
   0x9   :  { %95 = dma.done.wait [#allocation4], 16  }
   0xa   :  { %96 = vsyncadd [#allocation4], 4294967280 }
   0xb   :  { %41 = vsyncpa [#allocation3], 1 }
   0xc   :  { %42 = vsyncpa [#allocation4], 1 }

</bundles_post_ra>
